<compile_context>
chip_gen: v7x
topology: tpu7x:2x2x1
jax: 0.10.0
libtpu: 0.0.40
codegen_flags: <defaults>
</compile_context>

<pallas_src>
import functools

import jax
import jax.numpy as jnp
from jax import lax
from jax.experimental import pallas as pl
from jax.experimental.pallas import tpu as pltpu


def _round_up(x, m):
    return ((x + m - 1) // m) * m


def _edge_embed_kernel(r_ref, w_ref, b_ref, o_ref, *, gamma, r_min, center_step,
                       n_bins, softplus_dtype):
    # r_ref: (1, 1, TILE)        lane-dense row of edge lengths for this grid step
    # w_ref: (n_bins, out_dim)   Linear weight transposed to (in, out), zero-padded cols
    # b_ref: (1, out_dim)        Linear bias, zero-padded cols
    # o_ref: (TILE, out_dim)     edge embeddings (lane-dense stores; last grid block is masked
    #                            on writeback so padded tail rows never reach HBM)
    r_row = r_ref[0]                                     # (1, TILE)
    x = jnp.float32(-0.75) / r_row                       # edge_features: one divide per edge

    # RBF centers = linspace(r_min, r_max, n_bins), generated in-kernel (buffer, not trained).
    centers = (jnp.float32(r_min)
               + jnp.float32(center_step)
               * lax.broadcasted_iota(jnp.int32, (n_bins, 1), 0).astype(jnp.float32))

    diff = x - centers                                   # (n_bins, TILE), lane-dense
    rbf_t = jnp.exp(-jnp.float32(gamma) * diff * diff)   # (n_bins, TILE)

    # (TILE, out_dim) = rbf(TILE, n_bins) @ W(n_bins, out_dim); the RBF tile is consumed in its
    # lane-dense transposed form (contract dim 0 of both operands), never round-tripped to HBM.
    z = lax.dot_general(
        rbf_t, w_ref[...],
        dimension_numbers=(((0,), (0,)), ((), ())),
        preferred_element_type=jnp.float32,
    )
    z = (z + b_ref[...]).astype(softplus_dtype)

    # Numerically stable softplus: log(1 + exp(z)).  In f32 by default; bf16 on v6e/v7x when the
    # caller opts in (2 EUP transcendentals/element make EUP the binding slot once stores are bf16).
    sp = jnp.maximum(z, 0.0) + jnp.log(1.0 + jnp.exp(-jnp.abs(z)))
    o_ref[...] = sp.astype(o_ref.dtype)


def comformer_edge_embedding(edge_vec, weight, bias, *, r_min=-4.0, r_max=0.0,
                             tile_n=8192, out_dtype=jnp.float32,
                             softplus_dtype=jnp.float32):
    """Fused forward of HIENet ComformerEdgeEmbedding's radial branch.

    edge_vec: (N, 3) f32 edge vectors
    weight:   (out_dim, n_bins) f32  (torch nn.Linear layout)
    bias:     (out_dim,) f32
    Returns (edge_length (N,), edge_embedding (N, out_dim) in `out_dtype`).

    Perf knobs: `out_dtype=jnp.bfloat16` halves the dominant HBM write stream (v5e/v6e/v7x);
    `softplus_dtype=jnp.bfloat16` additionally halves the EUP cost on v6e/v7x (keep f32 on v5e).
    """
    n_edges = edge_vec.shape[0]
    out_dim, n_bins = weight.shape

    # r = ||edge_vec||  (bandwidth-trivial; computed in XLA so it can fuse with upstream ops,
    # and returned as EDGE_LENGTH just like the reference module).
    edge_vec = edge_vec.astype(jnp.float32)
    r = jnp.sqrt(jnp.sum(edge_vec * edge_vec, axis=-1))          # (N,)

    if n_edges == 0:
        return r, jnp.zeros((0, out_dim), out_dtype)

    # Pad the (tiny, resident) Linear params on the output axis so stores stay lane-dense for any
    # out_dim; padded columns are zero and sliced off only in the ragged case.
    out_dim_pad = _round_up(out_dim, 128)
    w_t = weight.T.astype(jnp.float32)                           # (n_bins, out_dim)
    b2d = bias.reshape(1, out_dim).astype(jnp.float32)
    if out_dim_pad != out_dim:
        w_t = jnp.pad(w_t, ((0, 0), (0, out_dim_pad - out_dim)))
        b2d = jnp.pad(b2d, ((0, 0), (0, out_dim_pad - out_dim)))

    # RBFExpansion constants (lengthscale=None branch).
    center_step = (r_max - r_min) / (n_bins - 1)
    gamma = 1.0 / center_step

    # --- tile selection (kernel is output-write-bound) ---
    out_itemsize = jnp.dtype(out_dtype).itemsize
    # Per-row VMEM estimate: double-buffered output block + ~3 f32 intermediates (matmul result /
    # softplus temps) + the (n_bins, TILE) rbf tile column. Keep under ~40 MB (fits the 48 MB
    # scoped limit we request, which is safe on v7x's 64 MiB VMEM as well as v5e/v6e).
    row_bytes = 2 * out_dim_pad * out_itemsize + 3 * out_dim_pad * 4 + n_bins * 4
    vmem_budget = 40 << 20
    vmem_cap_tile = max(128, (vmem_budget // row_bytes) // 128 * 128)
    # Keep >= ~8 grid blocks so the "parallel" axis distributes across both v7x TensorCores;
    # shrink the tile for small edge counts instead of running a 1-step grid.
    split_cap_tile = max(128, _round_up(pl.cdiv(n_edges, 8), 128))
    tile = max(128, min(int(tile_n), vmem_cap_tile, split_cap_tile))

    grid = pl.cdiv(n_edges, tile)
    n_pad = grid * tile
    # Pad r for the input blocks (pad value 1.0 keeps -0.75/r finite); the corresponding tail
    # output rows are computed in VMEM but masked on writeback, so no HBM traffic is wasted.
    r_pad = jnp.pad(r, (0, n_pad - n_edges), constant_values=1.0)
    r3d = r_pad.reshape(grid, 1, tile)

    kernel = functools.partial(
        _edge_embed_kernel, gamma=gamma, r_min=r_min,
        center_step=center_step, n_bins=n_bins, softplus_dtype=softplus_dtype)

    cost = pl.CostEstimate(
        flops=2 * n_edges * n_bins * out_dim_pad,
        transcendentals=2 * n_edges * out_dim_pad + n_edges * n_bins,
        bytes_accessed=(n_edges * out_dim_pad * out_itemsize   # embedding writes (dominant)
                        + n_pad * 4                            # r reads
                        + (n_bins + 1) * out_dim_pad * 4),     # resident weight/bias
    )

    emb = pl.pallas_call(
        kernel,
        out_shape=jax.ShapeDtypeStruct((n_edges, out_dim_pad), out_dtype),
        grid=(grid,),
        in_specs=[
            pl.BlockSpec((1, 1, tile), lambda i: (i, 0, 0)),           # r rows, lane-dense
            pl.BlockSpec((n_bins, out_dim_pad), lambda i: (0, 0)),     # Linear weight (resident)
            pl.BlockSpec((1, out_dim_pad), lambda i: (0, 0)),          # Linear bias (resident)
        ],
        out_specs=pl.BlockSpec((tile, out_dim_pad), lambda i: (i, 0)),
        compiler_params=pltpu.CompilerParams(
            dimension_semantics=("parallel",),
            vmem_limit_bytes=48 << 20),
        cost_estimate=cost,
    )(r3d, w_t, b2d)

    if out_dim_pad != out_dim:
        emb = emb[:, :out_dim]
    return r, emb


def _reference(edge_vec, weight, bias, r_min, r_max):
    """Plain-JAX reference (same math as the PyTorch forward), exact f32 matmul."""
    out_dim, n_bins = weight.shape
    r = jnp.linalg.norm(edge_vec, axis=-1)
    x = -0.75 / r
    centers = jnp.linspace(r_min, r_max, n_bins)
    gamma = 1.0 / ((r_max - r_min) / (n_bins - 1))
    rbf = jnp.exp(-gamma * (x[:, None] - centers[None, :]) ** 2)
    z = jnp.dot(rbf, weight.T, precision=jax.lax.Precision.HIGHEST) + bias
    return r, jax.nn.softplus(z)


if __name__ == "__main__":
    key = jax.random.PRNGKey(0)
    r_min, r_max = -4.0, 0.0

    # --- Case 1: module-consistent small shapes, out_dim a multiple of 128 ---
    k_vec, k_w, k_b, key = jax.random.split(key, 4)
    n_edges, radial_basis_num, out_dim = 512, 8, 128
    edge_vec = jax.random.uniform(k_vec, (n_edges, 3), dtype=jnp.float32,
                                  minval=0.3, maxval=3.0)
    weight = 0.1 * jax.random.normal(k_w, (out_dim, radial_basis_num), dtype=jnp.float32)
    bias = 0.1 * jax.random.normal(k_b, (out_dim,), dtype=jnp.float32)

    r_out, emb = comformer_edge_embedding(edge_vec, weight, bias, r_min=r_min, r_max=r_max)
    r_out, emb = jax.block_until_ready((r_out, emb))
    r_ref, emb_ref = _reference(edge_vec, weight, bias, r_min, r_max)
    assert r_out.shape == (n_edges,) and emb.shape == (n_edges, out_dim)
    assert jnp.allclose(r_out, r_ref, rtol=1e-5, atol=1e-5)
    # Tolerance covers default-precision MXU f32 matmul (bf16 passes) on the K=8 contraction.
    assert jnp.allclose(emb, emb_ref, rtol=3e-2, atol=3e-2)

    # --- Case 2: ragged edge count + out_dim not a multiple of 128 (padded columns path) ---
    k_vec, k_w, k_b, key = jax.random.split(key, 4)
    n_edges2, out_dim2 = 1000, 192
    edge_vec2 = jax.random.uniform(k_vec, (n_edges2, 3), dtype=jnp.float32,
                                   minval=0.3, maxval=3.0)
    weight2 = 0.1 * jax.random.normal(k_w, (out_dim2, radial_basis_num), dtype=jnp.float32)
    bias2 = 0.1 * jax.random.normal(k_b, (out_dim2,), dtype=jnp.float32)

    r_out2, emb2 = comformer_edge_embedding(edge_vec2, weight2, bias2, r_min=r_min, r_max=r_max)
    r_out2, emb2 = jax.block_until_ready((r_out2, emb2))
    r_ref2, emb_ref2 = _reference(edge_vec2, weight2, bias2, r_min, r_max)
    assert r_out2.shape == (n_edges2,) and emb2.shape == (n_edges2, out_dim2)
    assert jnp.allclose(r_out2, r_ref2, rtol=1e-5, atol=1e-5)
    assert jnp.allclose(emb2, emb_ref2, rtol=3e-2, atol=3e-2)

    # TODO(synk): data[KEY.EDGE_ATTR] = self.spherical(edge_vec) uses an external e3nn
    # spherical-harmonics module not specified here; the dead use_edge_conv branch is skipped.
    print("KERNEL_OK")
</pallas_src>

<mosaic_0001>
module attributes {stable_mosaic.version = 11 : i64} {
  func.func @_edge_embed_kernel(%arg0: i32, %arg1: memref<1x1x128xf32, #tpu.memory_space<vmem>>, %arg2: memref<8x128xf32, #tpu.memory_space<vmem>>, %arg3: memref<1x128xf32, #tpu.memory_space<vmem>>, %arg4: memref<128x128xf32, #tpu.memory_space<vmem>>) attributes {dimension_semantics = [#tpu.dimension_semantics<parallel>], iteration_bounds = array<i64: 4>, scalar_prefetch = 0 : i64, scratch_operands = 0 : i64, tpu.core_type = #tpu.core_type<tc>, window_params = [{transform_indices = @transform_0, window_bounds = array<i64: 1, 1, 128>}, {pipeline_mode = #tpu.pipeline_mode<synchronous>, transform_indices = @transform_1, window_bounds = array<i64: 8, 128>}, {pipeline_mode = #tpu.pipeline_mode<synchronous>, transform_indices = @transform_2, window_bounds = array<i64: 1, 128>}, {transform_indices = @transform_3, window_bounds = array<i64: 128, 128>}]} {
    %c0 = arith.constant 0 : index
    %c0_0 = arith.constant 0 : index
    %c0_1 = arith.constant 0 : index
    %0 = vector.load %arg1[%c0, %c0_0, %c0_1] : memref<1x1x128xf32, #tpu.memory_space<vmem>>, vector<1x1x128xf32>
    %1 = vector.shape_cast %0 : vector<1x1x128xf32> to vector<1x128xf32>
    %cst = arith.constant -7.500000e-01 : f32
    %2 = vector.broadcast %cst : f32 to vector<1x128xf32>
    %3 = arith.divf %2, %1 : vector<1x128xf32>
    %4 = tpu.iota {dimensions = array<i32: 0>} : vector<8x1xi32>
    %5 = arith.sitofp %4 : vector<8x1xi32> to vector<8x1xf32>
    %cst_2 = arith.constant 0.571428597 : f32
    %6 = vector.broadcast %cst_2 : f32 to vector<8x1xf32>
    %7 = arith.mulf %6, %5 : vector<8x1xf32>
    %cst_3 = arith.constant -4.000000e+00 : f32
    %8 = vector.broadcast %cst_3 : f32 to vector<8x1xf32>
    %9 = arith.addf %8, %7 : vector<8x1xf32>
    %10 = vector.broadcast %3 : vector<1x128xf32> to vector<8x128xf32>
    %11 = vector.broadcast %9 : vector<8x1xf32> to vector<8x128xf32>
    %12 = arith.subf %10, %11 : vector<8x128xf32>
    %cst_4 = arith.constant 0.000000e+00 : f32
    %cst_5 = arith.constant 1.750000e+00 : f32
    %13 = arith.subf %cst_4, %cst_5 : f32
    %14 = vector.broadcast %13 : f32 to vector<8x128xf32>
    %15 = arith.mulf %14, %12 : vector<8x128xf32>
    %16 = arith.mulf %15, %12 : vector<8x128xf32>
    %17 = math.exp %16 : vector<8x128xf32>
    %c0_6 = arith.constant 0 : index
    %c0_7 = arith.constant 0 : index
    %18 = vector.load %arg2[%c0_6, %c0_7] : memref<8x128xf32, #tpu.memory_space<vmem>>, vector<8x128xf32>
    %cst_8 = arith.constant dense<0.000000e+00> : vector<128x128xf32>
    %19 = tpu.matmul %17, %18, %cst_8 {dimension_numbers = #tpu.dot_dimension_numbers<[0], [0], [1], [1], [0, 1, 1, 1], [], []>} : vector<8x128xf32>, vector<8x128xf32>, vector<128x128xf32> -> vector<128x128xf32>
    %c0_9 = arith.constant 0 : index
    %c0_10 = arith.constant 0 : index
    %20 = vector.load %arg3[%c0_9, %c0_10] : memref<1x128xf32, #tpu.memory_space<vmem>>, vector<1x128xf32>
    %21 = vector.broadcast %20 : vector<1x128xf32> to vector<128x128xf32>
    %22 = arith.addf %19, %21 : vector<128x128xf32>
    %cst_11 = arith.constant 0.000000e+00 : f32
    %23 = vector.broadcast %cst_11 : f32 to vector<128x128xf32>
    %24 = arith.maximumf %22, %23 : vector<128x128xf32>
    %25 = math.absf %22 : vector<128x128xf32>
    %cst_12 = arith.constant 0.000000e+00 : f32
    %26 = vector.broadcast %cst_12 : f32 to vector<128x128xf32>
    %27 = arith.subf %26, %25 : vector<128x128xf32>
    %28 = math.exp %27 : vector<128x128xf32>
    %cst_13 = arith.constant 1.000000e+00 : f32
    %29 = vector.broadcast %cst_13 : f32 to vector<128x128xf32>
    %30 = arith.addf %29, %28 : vector<128x128xf32>
    %31 = math.log %30 : vector<128x128xf32>
    %32 = arith.addf %24, %31 : vector<128x128xf32>
    %c0_14 = arith.constant 0 : index
    %c0_15 = arith.constant 0 : index
    %33 = vector.load %arg4[%c0_14, %c0_15] : memref<128x128xf32, #tpu.memory_space<vmem>>, vector<128x128xf32>
    tpu.vector_store %arg4[%c0_14, %c0_15], %32 {strides = array<i32>} : memref<128x128xf32, #tpu.memory_space<vmem>>, vector<128x128xf32>,
    return
  }
  func.func @transform_0(%arg0: i32) -> (i32, i32, i32) {
    %c0_i32 = arith.constant 0 : i32
    %c0_i32_0 = arith.constant 0 : i32
    %c0_i32_1 = arith.constant 0 : i32
    return %arg0, %c0_i32, %c0_i32_0 : i32, i32, i32
  }
  func.func @transform_1(%arg0: i32) -> (i32, i32) {
    %c0_i32 = arith.constant 0 : i32
    %c0_i32_0 = arith.constant 0 : i32
    %c0_i32_1 = arith.constant 0 : i32
    return %c0_i32, %c0_i32_0 : i32, i32
  }
  func.func @transform_2(%arg0: i32) -> (i32, i32) {
    %c0_i32 = arith.constant 0 : i32
    %c0_i32_0 = arith.constant 0 : i32
    %c0_i32_1 = arith.constant 0 : i32
    return %c0_i32, %c0_i32_0 : i32, i32
  }
  func.func @transform_3(%arg0: i32) -> (i32, i32) {
    %c0_i32 = arith.constant 0 : i32
    %c0_i32_0 = arith.constant 0 : i32
    return %arg0, %c0_i32 : i32, i32
  }
}

</mosaic_0001>

<bundles_post_ra>
// kernel: tpu_custom_call.1
= control target key start
LH: loop header
LB: loop body
LE: loop exit
PB: predicated region body
PF: predicated region fallthrough
CT: control target
= control target key end

     0   :  { %8 = vsyncpa [#allocation3], 0  ;;  %s1385_s0 = inlined_call_operand.hbm [shape: f32[4,1,128], index: 0, kind: input, shape index: {}]   ;;  %s1386_s1 = inlined_call_operand.hbm [shape: f32[8,128], index: 1, kind: input, shape index: {}]   ;;  %s1387_s2 = inlined_call_operand.vmem [shape: f32[1,128], index: 2, kind: input, shape index: {}]   ;;  %s1388_s3 = inlined_call_operand.hbm [shape: f32[512,128], index: 3, kind: output, shape index: {}]  }
   0x1   :  { %10 = vsyncpa [#allocation3 + $0x1], 0 }
   0x2   :  { %11 = vsyncpa [#allocation6], 0 }
   0x3   :  { %12 = vsyncpa [#allocation4], 0 }
   0x4   :  { %14 = vsyncpa [#allocation4 + $0x1], 0  ;;  %s1063_s12 = smov 0   ;;  %s1065_s13 = smov 0  }
   0x5   :  { %s1067_s14 = smov 0   ;;  %s1069_s15 = smov 0  }
   0x6 LB: > { %s1084_s16 = sadd.s32 4294967295, %s1036_s15   ;;  %s704_s17 = sadd.s32 4294967294, %s1036_s15   ;;  %s1036_s15 = sphi %s1069_s15, %s1411_s15   ;;  %s1032_s14 = sphi %s1067_s14, %s1410_s14   ;;  %s1028_s13 = sphi %s1065_s13, %s1409_s13   ;;  %s1024_s12 = sphi %s1063_s12, %s1408_s12  }
   0x7   : > { %p40_p0 = scmp.ne.s32.totalorder %s1028_s13, %s1024_s12  ;;  %p1389_p1 = scmp.eq.s32.totalorder %s1084_s16, 0 }
   0x8   : > { %p112_p3 = scmp.eq.s32.totalorder %s704_s17, 3  ;;  %p705_p5 = scmp.ge.s32.totalorder %s1036_s15, 1 }
   0x9   : > { %p1093_p4 = por %p1389_p1, %p40_p0  ;;  %p119_p7 = scmp.lt.s32.totalorder %s1036_s15, 5 }
   0xa   : > { %p1098_p6 = por %p112_p3, %p40_p0  ;;  %s1038_s21 = smov [#allocation5]  }
   0xb   : > { %s1392_s18 = scalar_select %p1093_p4, 1, 0 }
   0xc   : > { %s1393_s19 = scalar_select %p1098_p6, 1, 0 }
   0xd   : > { %p1103_p8 = pnand %p705_p5, %p119_p7  ;;  %s132_s22 = sshll.u32 %s1038_s21, 4  ;;  %s133_s22 = int_to_ptr.vmem [resolvable:$true] %s132_s22 }
   0xe   : > { %s1110_s23 = sadd.s32 1, %s1036_s15   ;;  %s27_s27 = sadd.s32 1, %s1032_s14 }
   0xf   : > { %s1394_s20 = scalar_select %p1103_p8, 1, 0 }
  0x10   : > { %p788_p9 = pneg %p1103_p8  ;;  %s24_s25 = ssub.s32 %s1036_s15, %s1110_s23 }
  0x11   : > { %p1120_p11 = scmp.eq.s32.totalorder %s24_s25, 0  ;;  %s908_s30 = scalar_lea.hbm %s1386_s1, 128 }
  0x12   : > { %p1114_p10 = pnand %p788_p9, %p1389_p1  ;;  %p909_p13 = scmp.ne.s32.totalorder %s1386_s1, %s908_s30 }
  0x13   : > { %s1396_s26 = scalar_select %p1120_p11, 1, 0 }
  0x14   : > { %p910_p0 = pneg %p1114_p10  ;;  %p915_p7 = scmp.lt.u32.totalorder %s908_s30, %s1386_s1 }
  0x16   : > { %p911_p3 = pnand %p910_p0, %p909_p13 }
  0x18   : > { %p912_p5 = pneg %p911_p3 }
  0x1a   : > { %p917_p9 = pnand %p915_p7, %p912_p5 }
  0x1c   : > { %920 = shalt.err (!%p917_p9)
}
  0x1d   : > { %s921_s8 = scalar_lea.vmem %s133_s22, 128  ;;  %p929_p6 = scmp.lt.s32.totalorder %s133_s22, %s133_s22 }
  0x1e   : > { %p922_p1 = scmp.ne.s32.totalorder %s133_s22, %s921_s8  ;;  %p930_p4 = scmp.lt.s32.totalorder %s921_s8, %s921_s8 }
  0x20   : > { %p924_p2 = pnand %p922_p1, %p910_p0  ;;  %p931_p8 = por %p930_p4, %p929_p6 }
  0x22   : > { %p925_p12 = pneg %p924_p2 }
  0x24   : > { %p932_p11 = pnand %p931_p8, %p925_p12 }
  0x26   : > { %935 = shalt.err (!%p932_p11)
}
  0x27   : > { %791 = dma.hbm_to_vmem [thread:$0]  (!%p1114_p10), %s1386_s1, 128, %s133_s22, [#allocation6]  }
  0x28   : > { %p1397_p1 = scmp.ne.s32.totalorder %s1396_s26, 0  ;;  %p35_p2 = scmp.eq.s32.totalorder %s1036_s15, 0 }
  0x29   : > { %p1398_p4 = scmp.ne.s32.totalorder %s1032_s14, %s1028_s13  ;;  %p1399_p6 = scmp.eq.s32.totalorder %s1084_s16, 3 }
  0x2a   : > { %s1146_s11 = scalar_select %p1397_p1, %s1032_s14, %s27_s27  }
  0x2b   : > { %p1154_p8 = por %p1399_p6, %p1398_p4  ;;  %p801_p11 = scmp.lt.s32.totalorder %s1036_s15, 4 }
  0x2c   : > { %s146_s21 = sand.u32 1, %s1032_s14   ;;  %p1401_p12 = pmov %p1398_p4 }
  0x2d   : > { %s708_s24 = sshll.u32 %s1036_s15, 4  ;;  %s149_s22 = scalar_lea.vmem [#allocation2], %s146_s21 }
  0x2e   : > { %p36_p13 = por %p35_p2, %p1401_p12  ;;  %s1167_s29 = scalar_lea.hbm %s1385_s0, %s708_s24 }
  0x2f   : > { %s156_s26 = sshll.u32 %s149_s22, 4  ;;  %s147_s30 = scalar_lea.sflag [#allocation3], %s146_s21  ;;  %s1169_s26 = int_to_ptr.vmem [resolvable:$true] %s156_s26 }
  0x30   : > { %p1171_p10 = pnand %p801_p11, %p36_p13  ;;  %s936_s4 = scalar_lea.hbm %s1167_s29, 16 }
  0x31   : > { %p937_p0 = scmp.ne.s32.totalorder %s1167_s29, %s936_s4  ;;  %s941_s7 = scalar_lea.hbm %s1385_s0, 64 }
  0x32   : > { %p938_p3 = pneg %p1171_p10  ;;  %p942_p9 = scmp.lt.u32.totalorder %s1167_s29, %s1385_s0 }
  0x33   : > { %p943_p1 = scmp.lt.u32.totalorder %s941_s7, %s936_s4  ;;  %p945_p4 = scmp.lt.u32.totalorder %s936_s4, %s1167_s29 }
  0x34   : > { %p939_p5 = pnand %p938_p3, %p937_p0 }
  0x35   : > { %p944_p2 = por %p943_p1, %p942_p9 }
  0x36   : > { %p940_p7 = pneg %p939_p5 }
  0x37   : > { %p946_p6 = por %p945_p4, %p944_p2 }
  0x39   : > { %p947_p11 = pnand %p946_p6, %p940_p7 }
  0x3b   : > { %950 = shalt.err (!%p947_p11)
}
  0x3c   : > { %s951_s10 = scalar_lea.vmem %s1169_s26, 16  ;;  %s1039_s21 = smov [#allocation2]  }
  0x3d   : > { %p952_p12 = scmp.ne.s32.totalorder %s1169_s26, %s951_s10  ;;  %s956_s24 = sshll.u32 %s1039_s21, 4  ;;  %s957_s24 = int_to_ptr.vmem [resolvable:$false] %s956_s24 }
  0x3e   : > { %s958_s25 = scalar_lea.vmem %s957_s24, 32  ;;  %p959_p5 = scmp.lt.s32.totalorder %s1169_s26, %s957_s24 }
  0x3f   : > { %p954_p13 = pnand %p952_p12, %p938_p3  ;;  %p960_p9 = scmp.lt.s32.totalorder %s958_s25, %s951_s10 }
  0x41   : > { %p955_p0 = pneg %p954_p13  ;;  %p961_p1 = por %p960_p9, %p959_p5 }
  0x43   : > { %p962_p2 = pnand %p961_p1, %p955_p0 }
  0x45   : > { %965 = shalt.err (!%p962_p2)
}
  0x46   : > { %795 = dma.hbm_to_vmem [thread:$0]  (!%p1171_p10), %s1167_s29, 16, %s1169_s26, %s147_s30  }
  0x47   : > { %p1403_p7 = scmp.ne.s32.totalorder %s1394_s20, 0 }
  0x48   : > { %s1203_s28 = sand.u32 (!%p1403_p7), 1, %s1028_s13   ;;  %p1404_p3 = scmp.ne.s32.totalorder (!%p1403_p7), %s1392_s18, 0 }
  0x49   : > { %165 = sbr.rel (%p1403_p7) target bundleno = 572 (0x23c), region = 32  ;;  %s168_s22 = scalar_lea.sflag (!%p1403_p7), [#allocation3], %s1203_s28 }
  0x4a   : > { %s170_s4 = scalar_lea.vmem (!%p1403_p7), [#allocation2], %s1203_s28 }
  0x50   : > { %1011 = dma.done.wait (%p1404_p3), %s168_s22, 16  }
  0x51   : > { %1013 = vsyncadd (%p1404_p3), %s168_s22, 4294967280  ;;  %p1405_p4 = scmp.eq.s32.totalorder %s1084_s16, 0 }
  0x53   : > { %1015 = dma.done.wait (%p1405_p4), [#allocation6], 128   ;;  %p1406_p10 = pmov %p1405_p4 }
  0x54   : > { %v200_v0 = vlaneseq  ;;  %v197_v1 = vld [vmem:[%s170_s4] sm:$0x1]  ;;  %v216_v15 = vld [vmem:[#allocation5] sm:$0xff]  ;;  %vm256_vm0 = vcmask 64512   ;;  %s711_s29 = sshll.u32 %s1203_s28, 7  ;;  %s734_s27 = sshll.u32 %s1084_s16, 11 }
  0x55   : > { %1017 = vsyncadd (%p1406_p10), [#allocation6], 4294967168  ;;  %840 = vrcp.f32 %v197_v1  ;;  %752 = vmatprep.subr.mxu0 %v216_v15  ;;  %778 = vmatprep.subr.mxu1 %v216_v15  ;;  %v1234_v32 = vld [vmem:[%s1387_s2] ss:$0 sm:$0xff]  ;;  %s1279_s26 = scalar_lea.vmem [#allocation7], %s711_s29  ;;  %s1338_s7 = scalar_lea.hbm %s1388_s3, %s734_s27 }
  0x56   : > { %v201_v2 = vshrl.u32 %v200_v0, 7  ;;  %753 = vmatpush3.msra.mxu0 %v216_v15  ;;  %779 = vmatpush3.msra.mxu1 %v216_v15  ;;  %s624_s30 = sshll.u32 %s1279_s26, 4  ;;  %s611_s16 = scalar_lea.sflag [#allocation4], %s1203_s28  ;;  %s1340_s30 = int_to_ptr.vmem [resolvable:$true] %s624_s30 }
  0x57   : > { %s966_s8 = scalar_lea.vmem %s1340_s30, 2048  ;;  %s1040_s9 = smov [#allocation7]  }
  0x58   : > { %v202_v3 = vcvt.s32.f32 %v201_v2  ;;  %v208_v5 = vsub.s32 0, %v201_v2  ;;  %p967_p6 = scmp.ne.s32.totalorder %s1340_s30, %s966_s8  ;;  %s970_s10 = sshll.u32 %s1040_s9, 4  ;;  %s971_s10 = int_to_ptr.vmem [resolvable:$false] %s970_s10 }
  0x59   : > { %s972_s21 = scalar_lea.vmem %s971_s10, 4096  ;;  %p973_p13 = scmp.lt.s32.totalorder %s1340_s30, %s971_s10 }
  0x5a   : > { %v203_v4 = vmul.f32 0.5714286, %v202_v3  ;;  %p968_p11 = pnand %p967_p6, %p1154_p8  ;;  %p974_p0 = scmp.lt.s32.totalorder %s972_s21, %s966_s8 }
  0x5c   : > { %v204_v8 = vadd.f32 -4.0, %v203_v4  ;;  %p969_p12 = pneg %p968_p11  ;;  %p975_p5 = por %p974_p0, %p973_p13 }
  0x5e   : > { %p976_p9 = pnand %p975_p5, %p969_p12 }
  0x5f   : > { %v841_v6 = vpop.eup %840 }
  0x60   : > { %v199_v7 = vmul.f32 -0.75, %v841_v6 }
  0x62   : > { %v209_v9 = vrot.slane %v199_v7, %v208_v5 }
  0x64   : > { %v211_v10 = vsub.f32 %v209_v9, %v204_v8 }
  0x66   : > { %v212_v11 = vmul.f32 -1.75, %v211_v10 }
  0x68   : > { %v213_v12 = vmul.f32 %v212_v11, %v211_v10 }
  0x6a   : > { %v214_v13 = vmul.f32 1.442695, %v213_v12 }
  0x6c   : > { %842 = vpow2.f32 %v214_v13 }
  0x76   : > { %v843_v14 = vpop.eup %842 }
  0x77   : > { %224 = vxpose.xlu0.b32.start.end [1/1] (short) %v843_v14, 128 }
  0xf7   : > { %v240_v16 = vpop.trf.xlu0 }
  0xf8   : > { %754 = vmatprep.mubr.msk.f32.mxu0 %vm256_vm0, %v240_v16 }
  0xfb   : > { %v241_v17 = vpop.trf.xlu0 }
  0xfc   : > { %755 = vmatmul.mubr.msk.f32.vlgmr.msra.gmra.mrb[0].mxu0 %vm256_vm0, %v241_v17 }
  0xff   : > { %v242_v18 = vpop.trf.xlu0 }
 0x100   : > { %757 = vmatprep.mubr.msk.f32.mxu0 %vm256_vm0, %v242_v18 }
 0x103   : > { %v243_v19 = vpop.trf.xlu0 }
 0x104   : > { %758 = vmatmul.mubr.msk.f32.gmra.mrb[2].mxu0 %vm256_vm0, %v243_v19 }
 0x107   : > { %v244_v20 = vpop.trf.xlu0 }
 0x108   : > { %760 = vmatprep.mubr.msk.f32.mxu0 %vm256_vm0, %v244_v20 }
 0x10b   : > { %v245_v21 = vpop.trf.xlu0 }
 0x10c   : > { %761 = vmatmul.mubr.msk.f32.gmra.mrb[4].mxu0 %vm256_vm0, %v245_v21 }
 0x10f   : > { %v246_v22 = vpop.trf.xlu0 }
 0x110   : > { %763 = vmatprep.mubr.msk.f32.mxu0 %vm256_vm0, %v246_v22 }
 0x113   : > { %v247_v23 = vpop.trf.xlu0 }
 0x114   : > { %764 = vmatmul.mubr.msk.f32.gmra.mrb[6].mxu0 %vm256_vm0, %v247_v23 }
 0x117   : > { %v248_v24 = vpop.trf.xlu0 }
 0x118   : > { %766 = vmatprep.mubr.msk.f32.mxu1 %vm256_vm0, %v248_v24 }
 0x11b   : > { %v249_v25 = vpop.trf.xlu0 }
 0x11c   : > { %767 = vmatmul.mubr.msk.f32.vlgmr.msra.gmra.mrb[0].mxu1 %vm256_vm0, %v249_v25 }
 0x11f   : > { %v250_v26 = vpop.trf.xlu0 }
 0x120   : > { %769 = vmatprep.mubr.msk.f32.mxu1 %vm256_vm0, %v250_v26 }
 0x123   : > { %v251_v27 = vpop.trf.xlu0 }
 0x124   : > { %770 = vmatmul.mubr.msk.f32.gmra.mrb[2].mxu1 %vm256_vm0, %v251_v27 }
 0x127   : > { %v252_v28 = vpop.trf.xlu0 }
 0x128   : > { %772 = vmatprep.mubr.msk.f32.mxu1 %vm256_vm0, %v252_v28 }
 0x12b   : > { %v253_v29 = vpop.trf.xlu0 }
 0x12c   : > { %773 = vmatmul.mubr.msk.f32.gmra.mrb[4].mxu1 %vm256_vm0, %v253_v29 }
 0x12f   : > { %v254_v30 = vpop.trf.xlu0 }
 0x130   : > { %775 = vmatprep.mubr.msk.f32.mxu1 %vm256_vm0, %v254_v30 }
 0x133   : > { %v255_v31 = vpop.trf.xlu0 }
 0x134   : > { %776 = vmatmul.mubr.msk.f32.gmra.mrb[6].mxu1 %vm256_vm0, %v255_v31 }
 0x1cf   : > { %v756_v33 = vpop.f32.mrb[0].mxu0 }
 0x1d0   : > { %v1237_v34 = vadd.f32 %v756_v33, %v1234_v32  ;;  %v371_v35 = vpop.f32.mrb[1].mxu0 }
 0x1d1   : > { %v1240_v36 = vadd.f32 %v1234_v32, %v371_v35 }
 0x1d2   : > { %v467_v37 = vand.u32 2147483647, %v1237_v34  ;;  %v451_v20 = vmax.f32 %v1237_v34, 0.0 }
 0x1d3   : > { %v466_v38 = vand.u32 2147483647, %v1240_v36  ;;  %v450_v24 = vmax.f32 %v1240_v36, 0.0 }
 0x1d4   : > { %v483_v39 = vsub.f32 0.0, %v467_v37 }
 0x1d5   : > { %v482_v40 = vsub.f32 0.0, %v466_v38 }
 0x1d6   : > { %v500_v41 = vmul.f32 1.442695, %v483_v39 }
 0x1d7   : > { %v498_v42 = vmul.f32 1.442695, %v482_v40  ;;  %v759_v43 = vpop.f32.mrb[2].mxu0 }
 0x1d8   : > { %844 = vpow2.f32 %v500_v41  ;;  %v1245_v44 = vadd.f32 %v759_v43, %v1234_v32  ;;  %v381_v45 = vpop.f32.mrb[3].mxu0 }
 0x1d9   : > { %846 = vpow2.f32 %v498_v42  ;;  %v1248_v46 = vadd.f32 %v1234_v32, %v381_v45 }
 0x1da   : > { %v469_v47 = vand.u32 2147483647, %v1245_v44  ;;  %v453_v43 = vmax.f32 %v1245_v44, 0.0 }
 0x1db   : > { %v468_v48 = vand.u32 2147483647, %v1248_v46 }
 0x1dc   : > { %v485_v49 = vsub.f32 0.0, %v469_v47 }
 0x1dd   : > { %v484_v50 = vsub.f32 0.0, %v468_v48 }
 0x1de   : > { %v504_v51 = vmul.f32 1.442695, %v485_v49  ;;  %v452_v49 = vmax.f32 %v1248_v46, 0.0 }
 0x1df   : > { %v502_v52 = vmul.f32 1.442695, %v484_v50  ;;  %v762_v53 = vpop.f32.mrb[4].mxu0 }
 0x1e0   : > { %848 = vpow2.f32 %v504_v51  ;;  %v1253_v54 = vadd.f32 %v762_v53, %v1234_v32  ;;  %v391_v55 = vpop.f32.mrb[5].mxu0 }
 0x1e1   : > { %850 = vpow2.f32 %v502_v52  ;;  %v1256_v56 = vadd.f32 %v1234_v32, %v391_v55 }
 0x1e2   : > { %v845_v57 = vpop.eup %844  ;;  %v471_v58 = vand.u32 2147483647, %v1253_v54 }
 0x1e3   : > { %v847_v59 = vpop.eup %846  ;;  %v531_v60 = vadd.f32 1.0, %v845_v57  ;;  %v470_v61 = vand.u32 2147483647, %v1256_v56 }
 0x1e4   : > { %v530_v62 = vadd.f32 1.0, %v847_v59  ;;  %v487_v63 = vsub.f32 0.0, %v471_v58 }
 0x1e5   : > { %852 = vlog2.f32 %v531_v60  ;;  %v486_v0 = vsub.f32 0.0, %v470_v61 }
 0x1e6   : > { %854 = vlog2.f32 %v530_v62  ;;  %v508_v1 = vmul.f32 1.442695, %v487_v63 }
 0x1e7   : > { %v506_v2 = vmul.f32 1.442695, %v486_v0  ;;  %v765_v3 = vpop.f32.mrb[6].mxu0 }
 0x1e8   : > { %856 = vpow2.f32 %v508_v1  ;;  %v1261_v4 = vadd.f32 %v765_v3, %v1234_v32  ;;  %v401_v5 = vpop.f32.mrb[7].mxu0  ;;  %v455_v3 = vmax.f32 %v1253_v54, 0.0 }
 0x1e9   : > { %858 = vpow2.f32 %v506_v2  ;;  %v1264_v6 = vadd.f32 %v1234_v32, %v401_v5 }
 0x1ea   : > { %v849_v7 = vpop.eup %848  ;;  %v473_v8 = vand.u32 2147483647, %v1261_v4 }
 0x1eb   : > { %v851_v9 = vpop.eup %850  ;;  %v533_v10 = vadd.f32 1.0, %v849_v7  ;;  %v472_v11 = vand.u32 2147483647, %v1264_v6 }
 0x1ec   : > { %v532_v12 = vadd.f32 1.0, %v851_v9  ;;  %v489_v13 = vsub.f32 0.0, %v473_v8  ;;  %v454_v9 = vmax.f32 %v1256_v56, 0.0 }
 0x1ed   : > { %860 = vlog2.f32 %v533_v10  ;;  %v488_v14 = vsub.f32 0.0, %v472_v11 }
 0x1ee   : > { %862 = vlog2.f32 %v532_v12  ;;  %v512_v15 = vmul.f32 1.442695, %v489_v13 }
 0x1ef   : > { %v853_v16 = vpop.eup %852  ;;  %v510_v17 = vmul.f32 1.442695, %v488_v14  ;;  %v768_v18 = vpop.f32.mrb[0].mxu1 }
 0x1f0   : > { %v855_v19 = vpop.eup %854  ;;  %v549_v21 = vmul.f32 0.6931472, %v853_v16  ;;  %864 = vpow2.f32 %v512_v15  ;;  %v1271_v22 = vadd.f32 %v768_v18, %v1234_v32  ;;  %v411_v23 = vpop.f32.mrb[1].mxu1 }
 0x1f1   : > { %v547_v25 = vmul.f32 0.6931472, %v855_v19  ;;  %866 = vpow2.f32 %v510_v17  ;;  %v1275_v26 = vadd.f32 %v1234_v32, %v411_v23 }
 0x1f2   : > { %v857_v27 = vpop.eup %856  ;;  %v579_v28 = vadd.f32 %v549_v21, %v451_v20  ;;  %v475_v29 = vand.u32 2147483647, %v1271_v22 }
 0x1f3   : > { %v859_v30 = vpop.eup %858  ;;  %v578_v31 = vadd.f32 %v547_v25, %v450_v24  ;;  %v535_v33 = vadd.f32 1.0, %v857_v27  ;;  %v474_v34 = vand.u32 2147483647, %v1275_v26  ;;  %v457_v27 = vmax.f32 %v1261_v4, 0.0 }
 0x1f4   : > { %595 = vst [vmem:[%s1279_s26 + $0x8] sm:$0xff] %v579_v28  ;;  %v534_v35 = vadd.f32 1.0, %v859_v30  ;;  %v491_v36 = vsub.f32 0.0, %v475_v29 }
 0x1f5   : > { %594 = vst [vmem:[%s1279_s26] sm:$0xff] %v578_v31  ;;  %868 = vlog2.f32 %v535_v33  ;;  %v490_v37 = vsub.f32 0.0, %v474_v34  ;;  %v456_v31 = vmax.f32 %v1264_v6, 0.0 }
 0x1f6   : > { %870 = vlog2.f32 %v534_v35  ;;  %v516_v38 = vmul.f32 1.442695, %v491_v36 }
 0x1f7   : > { %v861_v39 = vpop.eup %860  ;;  %v514_v40 = vmul.f32 1.442695, %v490_v37  ;;  %v771_v41 = vpop.f32.mrb[2].mxu1 }
 0x1f8   : > { %v863_v42 = vpop.eup %862  ;;  %v553_v45 = vmul.f32 0.6931472, %v861_v39  ;;  %872 = vpow2.f32 %v516_v38  ;;  %v1285_v47 = vadd.f32 %v771_v41, %v1234_v32  ;;  %v421_v48 = vpop.f32.mrb[3].mxu1 }
 0x1f9   : > { %v551_v50 = vmul.f32 0.6931472, %v863_v42  ;;  %874 = vpow2.f32 %v514_v40  ;;  %v1289_v51 = vadd.f32 %v1234_v32, %v421_v48 }
 0x1fa   : > { %v865_v52 = vpop.eup %864  ;;  %v581_v53 = vadd.f32 %v553_v45, %v453_v43  ;;  %v477_v55 = vand.u32 2147483647, %v1285_v47 }
 0x1fb   : > { %v867_v44 = vpop.eup %866  ;;  %v580_v57 = vadd.f32 %v551_v50, %v452_v49  ;;  %v537_v58 = vadd.f32 1.0, %v865_v52  ;;  %v476_v59 = vand.u32 2147483647, %v1289_v51  ;;  %v459_v49 = vmax.f32 %v1271_v22, 0.0 }
 0x1fc   : > { %597 = vst [vmem:[%s1279_s26 + $0x18] sm:$0xff] %v581_v53  ;;  %v536_v60 = vadd.f32 1.0, %v867_v44  ;;  %v493_v61 = vsub.f32 0.0, %v477_v55  ;;  %v458_v52 = vmax.f32 %v1275_v26, 0.0  ;;  %v460_v26 = vmax.f32 %v1289_v51, 0.0 }
 0x1fd   : > { %596 = vst [vmem:[%s1279_s26 + $0x10] sm:$0xff] %v580_v57  ;;  %876 = vlog2.f32 %v537_v58  ;;  %v492_v46 = vsub.f32 0.0, %v476_v59 }
 0x1fe   : > { %878 = vlog2.f32 %v536_v60  ;;  %v520_v62 = vmul.f32 1.442695, %v493_v61 }
 0x1ff   : > { %v869_v63 = vpop.eup %868  ;;  %v518_v0 = vmul.f32 1.442695, %v492_v46  ;;  %v774_v1 = vpop.f32.mrb[4].mxu1  ;;  %v461_v46 = vmax.f32 %v1285_v47, 0.0 }
 0x200   : > { %v871_v2 = vpop.eup %870  ;;  %v557_v5 = vmul.f32 0.6931472, %v869_v63  ;;  %880 = vpow2.f32 %v520_v62  ;;  %v1297_v7 = vadd.f32 %v774_v1, %v1234_v32  ;;  %v431_v8 = vpop.f32.mrb[5].mxu1 }
 0x201   : > { %v555_v10 = vmul.f32 0.6931472, %v871_v2  ;;  %882 = vpow2.f32 %v518_v0  ;;  %v1301_v11 = vadd.f32 %v1234_v32, %v431_v8 }
 0x202   : > { %v873_v12 = vpop.eup %872  ;;  %v583_v13 = vadd.f32 %v557_v5, %v455_v3  ;;  %v479_v14 = vand.u32 2147483647, %v1297_v7 }
 0x203   : > { %v875_v54 = vpop.eup %874  ;;  %v582_v15 = vadd.f32 %v555_v10, %v454_v9  ;;  %v539_v16 = vadd.f32 1.0, %v873_v12  ;;  %v478_v17 = vand.u32 2147483647, %v1301_v11  ;;  %v463_v10 = vmax.f32 %v1297_v7, 0.0 }
 0x204   : > { %599 = vst [vmem:[%s1279_s26 + $0x28] sm:$0xff] %v583_v13  ;;  %v538_v18 = vadd.f32 1.0, %v875_v54  ;;  %v495_v19 = vsub.f32 0.0, %v479_v14  ;;  %v462_v12 = vmax.f32 %v1301_v11, 0.0 }
 0x205   : > { %598 = vst [vmem:[%s1279_s26 + $0x20] sm:$0xff] %v582_v15  ;;  %884 = vlog2.f32 %v539_v16  ;;  %v494_v56 = vsub.f32 0.0, %v478_v17 }
 0x206   : > { %886 = vlog2.f32 %v538_v18  ;;  %v524_v20 = vmul.f32 1.442695, %v495_v19 }
 0x207   : > { %v877_v21 = vpop.eup %876  ;;  %v522_v23 = vmul.f32 1.442695, %v494_v56  ;;  %v777_v24 = vpop.f32.mrb[6].mxu1 }
 0x208   : > { %v879_v25 = vpop.eup %878  ;;  %v561_v28 = vmul.f32 0.6931472, %v877_v21  ;;  %888 = vpow2.f32 %v524_v20  ;;  %v1309_v29 = vadd.f32 %v777_v24, %v1234_v32  ;;  %v441_v30 = vpop.f32.mrb[7].mxu1 }
 0x209   : > { %v559_v33 = vmul.f32 0.6931472, %v879_v25  ;;  %890 = vpow2.f32 %v522_v23  ;;  %v1313_v34 = vadd.f32 %v1234_v32, %v441_v30 }
 0x20a   : > { %v881_v35 = vpop.eup %880  ;;  %v585_v36 = vadd.f32 %v561_v28, %v457_v27  ;;  %v481_v37 = vand.u32 2147483647, %v1309_v29  ;;  %v465_v17 = vmax.f32 %v1309_v29, 0.0 }
 0x20b   : > { %v883_v4 = vpop.eup %882  ;;  %v584_v38 = vadd.f32 %v559_v33, %v456_v31  ;;  %v541_v39 = vadd.f32 1.0, %v881_v35  ;;  %v480_v40 = vand.u32 2147483647, %v1313_v34  ;;  %v464_v7 = vmax.f32 %v1313_v34, 0.0 }
 0x20c   : > { %601 = vst [vmem:[%s1279_s26 + $0x38] sm:$0xff] %v585_v36  ;;  %v540_v41 = vadd.f32 1.0, %v883_v4  ;;  %v497_v42 = vsub.f32 0.0, %v481_v37 }
 0x20d   : > { %600 = vst [vmem:[%s1279_s26 + $0x30] sm:$0xff] %v584_v38  ;;  %892 = vlog2.f32 %v541_v39  ;;  %v496_v6 = vsub.f32 0.0, %v480_v40 }
 0x20e   : > { %894 = vlog2.f32 %v540_v41  ;;  %v528_v43 = vmul.f32 1.442695, %v497_v42 }
 0x20f   : > { %v885_v32 = vpop.eup %884  ;;  %v526_v45 = vmul.f32 1.442695, %v496_v6 }
 0x210   : > { %v887_v48 = vpop.eup %886  ;;  %v565_v50 = vmul.f32 0.6931472, %v885_v32  ;;  %896 = vpow2.f32 %v528_v43 }
 0x211   : > { %v563_v53 = vmul.f32 0.6931472, %v887_v48  ;;  %898 = vpow2.f32 %v526_v45 }
 0x212   : > { %v889_v55 = vpop.eup %888  ;;  %v587_v44 = vadd.f32 %v565_v50, %v459_v49 }
 0x213   : > { %v891_v57 = vpop.eup %890  ;;  %v586_v58 = vadd.f32 %v563_v53, %v458_v52  ;;  %v543_v59 = vadd.f32 1.0, %v889_v55 }
 0x214   : > { %603 = vst [vmem:[%s1279_s26 + $0x48] sm:$0xff] %v587_v44  ;;  %v542_v60 = vadd.f32 1.0, %v891_v57 }
 0x215   : > { %602 = vst [vmem:[%s1279_s26 + $0x40] sm:$0xff] %v586_v58  ;;  %900 = vlog2.f32 %v543_v59 }
 0x216   : > { %902 = vlog2.f32 %v542_v60 }
 0x217   : > { %v893_v61 = vpop.eup %892 }
 0x218   : > { %v895_v22 = vpop.eup %894  ;;  %v569_v62 = vmul.f32 0.6931472, %v893_v61 }
 0x219   : > { %v567_v63 = vmul.f32 0.6931472, %v895_v22 }
 0x21a   : > { %v897_v0 = vpop.eup %896  ;;  %v589_v1 = vadd.f32 %v569_v62, %v461_v46 }
 0x21b   : > { %v899_v2 = vpop.eup %898  ;;  %v588_v3 = vadd.f32 %v567_v63, %v460_v26  ;;  %v545_v5 = vadd.f32 1.0, %v897_v0 }
 0x21c   : > { %605 = vst [vmem:[%s1279_s26 + $0x58] sm:$0xff] %v589_v1  ;;  %v544_v8 = vadd.f32 1.0, %v899_v2 }
 0x21d   : > { %604 = vst [vmem:[%s1279_s26 + $0x50] sm:$0xff] %v588_v3  ;;  %904 = vlog2.f32 %v545_v5 }
 0x21e   : > { %906 = vlog2.f32 %v544_v8 }
 0x21f   : > { %v901_v9 = vpop.eup %900 }
 0x220   : > { %v903_v47 = vpop.eup %902  ;;  %v573_v51 = vmul.f32 0.6931472, %v901_v9 }
 0x221   : > { %v571_v13 = vmul.f32 0.6931472, %v903_v47 }
 0x222   : > { %v591_v14 = vadd.f32 %v573_v51, %v463_v10 }
 0x223   : > { %v590_v54 = vadd.f32 %v571_v13, %v462_v12 }
 0x224   : > { %607 = vst [vmem:[%s1279_s26 + $0x68] sm:$0xff] %v591_v14 }
 0x225   : > { %606 = vst [vmem:[%s1279_s26 + $0x60] sm:$0xff] %v590_v54 }
 0x227   : > { %v905_v15 = vpop.eup %904 }
 0x228   : > { %v907_v16 = vpop.eup %906  ;;  %v577_v18 = vmul.f32 0.6931472, %v905_v15 }
 0x229   : > { %v575_v19 = vmul.f32 0.6931472, %v907_v16 }
 0x22a   : > { %v593_v11 = vadd.f32 %v577_v18, %v465_v17 }
 0x22b   : > { %v592_v56 = vadd.f32 %v575_v19, %v464_v7 }
 0x22c   : > { %609 = vst [vmem:[%s1279_s26 + $0x78] sm:$0xff] %v593_v11 }
 0x22d   : > { %608 = vst [vmem:[%s1279_s26 + $0x70] sm:$0xff] %v592_v56 }
 0x22e   : > { %979 = shalt.err (!%p976_p9)
}
 0x22f   : > { %s980_s24 = scalar_lea.hbm %s1338_s7, 2048  ;;  %s984_s4 = scalar_lea.hbm %s1388_s3, 8192 }
 0x230   : > { %p981_p1 = scmp.ne.s32.totalorder %s1338_s7, %s980_s24  ;;  %p985_p3 = scmp.lt.u32.totalorder %s1338_s7, %s1388_s3 }
 0x231   : > { %p986_p4 = scmp.lt.u32.totalorder %s984_s4, %s980_s24  ;;  %p988_p6 = scmp.lt.u32.totalorder %s980_s24, %s1338_s7 }
 0x232   : > { %p982_p2 = pnand %p981_p1, %p1154_p8 }
 0x233   : > { %p987_p10 = por %p986_p4, %p985_p3 }
 0x234   : > { %p983_p7 = pneg %p982_p2 }
 0x235   : > { %p989_p11 = por %p988_p6, %p987_p10 }
 0x237   : > { %p990_p12 = pnand %p989_p11, %p983_p7 }
 0x239   : > { %993 = shalt.err (!%p990_p12)
}
 0x23a   : > { %s1041_s29 = smov 128   ;;  %s1042_s26 = smov 8  }
 0x23b   : > { %786 = dma.vmem_to_hbm [thread:$0]  (%p1154_p8), %s1340_s30, 2048, %s1338_s7, %s611_s16, %s1041_s29, %s1041_s29, %s1042_s26  }
 0x23c PF: > { %p803_p13 = scmp.ge.s32.totalorder %s1036_s15, 2  ;;  %s639_s27 = sand.u32 1, %s1024_s12  }
 0x23d   : > { %p1407_p0 = scmp.ne.s32.totalorder %s1393_s19, 0  ;;  %s640_s5 = scalar_lea.sflag [#allocation4], %s639_s27 }
 0x23f   : > { %p797_p5 = pnand %p803_p13, %p1407_p0 }
 0x241   : > { %1019 = dma.done.wait (!%p797_p5), %s640_s5, 2048  }
 0x242   : > { %1021 = vsyncadd (!%p797_p5), %s640_s5, 4294965248  ;;  %p17_p9 = scmp.ge.s32.totalorder %s1110_s23, 6   ;;  %s1408_s12 = smov %s1028_s13 }
 0x243   : > { %s1409_s13 = smov %s1032_s14  ;;  %s1410_s14 = smov %s1146_s11 }
 0x244   : > { %s1411_s15 = smov %s1110_s23  ;;  %19 = sbr.rel (!%p17_p9) target bundleno = 6 (0x6), region = 81 }
 0x24b   :  { %645 = vsyncpa [#allocation3], 1 }
 0x24c   :  { %647 = vsyncpa [#allocation3 + $0x1], 1 }
 0x24d   :  { %648 = vsyncpa [#allocation6], 1 }
 0x24e   :  { %649 = vsyncpa [#allocation4], 1 }
 0x24f   :  { %651 = vsyncpa [#allocation4 + $0x1], 1 }

</bundles_post_ra>
